<compile_context>
chip_gen: v7x
topology: tpu7x:2x2x1
jax: 0.10.0
libtpu: 0.0.40
codegen_flags: <defaults>
</compile_context>

<pallas_src>
from functools import partial

import jax
import jax.numpy as jnp
from jax import lax
from jax.experimental import pallas as pl
from jax.experimental.pallas import tpu as pltpu


def _make_kernel(M: int, K: int, N: int):
    """Build a kernel closed over static dims; input is one packed slab.

    Slab layout (rows x cols, cols = max(K, N)):
      rows [0, M)        cols [0, K) : x         (M, K)
      rows [M, M+K)      cols [0, N) : W.T       (K, N)   (canonical K-major)
      row  M+K           cols [0, N) : bias      (1, N)
    """

    def kernel(slab_ref, o_ref):
        x = slab_ref[0:M, 0:K]                      # (M, K)
        wt = slab_ref[M:M + K, 0:N]                 # (K, N)
        b = slab_ref[M + K:M + K + 1, 0:N]          # (1, N)

        xs = x + jnp.sin(x)                         # VPU add + EUP sin

        if K <= 8 and N <= 128:
            # Tiny contraction: unrolled VPU broadcast-MAC, bias folded into
            # the accumulator init. Skips MXU systolic push / drain latency.
            acc = jnp.broadcast_to(b, (M, N))
            for k in range(K):                      # static unroll, K=4
                acc = acc + xs[:, k:k + 1] * wt[k:k + 1, :]
            o_ref[...] = acc.astype(o_ref.dtype)
        else:
            # Larger shapes: single MXU contraction in canonical (K,N) form.
            out = lax.dot_general(
                xs, wt,
                dimension_numbers=(((1,), (0,)), ((), ())),
                preferred_element_type=jnp.float32,
            )
            o_ref[...] = (out + b).astype(o_ref.dtype)

    return kernel


@jax.jit
def simple_model(x, weight, bias):
    M, K = x.shape
    N, K2 = weight.shape
    assert K == K2

    # Pack x, W.T and bias into a single slab -> one input DMA.
    cols = max(K, N)
    rows = M + K + 1
    slab = jnp.zeros((rows, cols), jnp.float32)
    slab = slab.at[0:M, 0:K].set(x.astype(jnp.float32))
    slab = slab.at[M:M + K, 0:N].set(weight.T.astype(jnp.float32))
    slab = slab.at[M + K, 0:N].set(bias.astype(jnp.float32))

    vmem = pltpu.MemorySpace.VMEM
    return pl.pallas_call(
        _make_kernel(M, K, N),
        out_shape=jax.ShapeDtypeStruct((M, N), jnp.float32),
        # No grid: problem is far below one (8,128) vreg; full slab lives in
        # VMEM. (If M ever scales, add a grid over M with
        # dimension_semantics=("parallel",) and re-derive tiles for v7x's
        # 64 MiB VMEM.)
        in_specs=[pl.BlockSpec(memory_space=vmem)],    # packed slab
        out_specs=pl.BlockSpec(memory_space=vmem),
    )(slab)


if __name__ == "__main__":
    key = jax.random.PRNGKey(0)
    kx, kw, kb = jax.random.split(key, 3)

    M, K, N = 3, 4, 5  # x: (3,4); Linear(4,5) -> weight (5,4), bias (5,)

    x = jax.random.normal(kx, (M, K), dtype=jnp.float32)
    # PyTorch-style uniform(-1/sqrt(K), 1/sqrt(K)) init, deterministic.
    bound = 1.0 / jnp.sqrt(jnp.float32(K))
    weight = jax.random.uniform(kw, (N, K), dtype=jnp.float32,
                                minval=-bound, maxval=bound)
    bias = jax.random.uniform(kb, (N,), dtype=jnp.float32,
                              minval=-bound, maxval=bound)

    out = simple_model(x, weight, bias)
    out = jax.block_until_ready(out)

    # Reference: original un-fused formulation in plain JAX.
    ref = (x @ weight.T + bias) + jnp.sin(x) @ weight.T
    assert out.shape == (M, N)
    assert jnp.allclose(out, ref, atol=1e-5, rtol=1e-5)

    print("KERNEL_OK")
</pallas_src>

<mosaic_0001>
module attributes {stable_mosaic.version = 11 : i64} {
  func.func @kernel(%arg0: memref<8x5xf32, #tpu.memory_space<vmem>>, %arg1: memref<3x5xf32, #tpu.memory_space<vmem>>) attributes {dimension_semantics = [], scalar_prefetch = 0 : i64, scratch_operands = 0 : i64, tpu.core_type = #tpu.core_type<tc>} {
    %c0 = arith.constant 0 : index
    %c0_0 = arith.constant 0 : index
    %0 = vector.load %arg0[%c0, %c0_0] : memref<8x5xf32, #tpu.memory_space<vmem>>, vector<3x4xf32>
    %c3 = arith.constant 3 : index
    %c0_1 = arith.constant 0 : index
    %1 = vector.load %arg0[%c3, %c0_1] : memref<8x5xf32, #tpu.memory_space<vmem>>, vector<4x5xf32>
    %c7 = arith.constant 7 : index
    %c0_2 = arith.constant 0 : index
    %2 = vector.load %arg0[%c7, %c0_2] : memref<8x5xf32, #tpu.memory_space<vmem>>, vector<1x5xf32>
    %3 = math.sin %0 : vector<3x4xf32>
    %4 = arith.addf %0, %3 : vector<3x4xf32>
    %5 = vector.shape_cast %2 : vector<1x5xf32> to vector<1x5xf32>
    %6 = vector.broadcast %5 : vector<1x5xf32> to vector<3x5xf32>
    %7 = vector.extract_strided_slice %4 {offsets = [0, 0], sizes = [3, 1], strides = [1, 1]} : vector<3x4xf32> to vector<3x1xf32>
    %8 = vector.extract_strided_slice %1 {offsets = [0, 0], sizes = [1, 5], strides = [1, 1]} : vector<4x5xf32> to vector<1x5xf32>
    %9 = vector.broadcast %7 : vector<3x1xf32> to vector<3x5xf32>
    %10 = vector.broadcast %8 : vector<1x5xf32> to vector<3x5xf32>
    %11 = arith.mulf %9, %10 : vector<3x5xf32>
    %12 = arith.addf %6, %11 : vector<3x5xf32>
    %13 = vector.extract_strided_slice %4 {offsets = [0, 1], sizes = [3, 1], strides = [1, 1]} : vector<3x4xf32> to vector<3x1xf32>
    %14 = vector.extract_strided_slice %1 {offsets = [1, 0], sizes = [1, 5], strides = [1, 1]} : vector<4x5xf32> to vector<1x5xf32>
    %15 = vector.broadcast %13 : vector<3x1xf32> to vector<3x5xf32>
    %16 = vector.broadcast %14 : vector<1x5xf32> to vector<3x5xf32>
    %17 = arith.mulf %15, %16 : vector<3x5xf32>
    %18 = arith.addf %12, %17 : vector<3x5xf32>
    %19 = vector.extract_strided_slice %4 {offsets = [0, 2], sizes = [3, 1], strides = [1, 1]} : vector<3x4xf32> to vector<3x1xf32>
    %20 = vector.extract_strided_slice %1 {offsets = [2, 0], sizes = [1, 5], strides = [1, 1]} : vector<4x5xf32> to vector<1x5xf32>
    %21 = vector.broadcast %19 : vector<3x1xf32> to vector<3x5xf32>
    %22 = vector.broadcast %20 : vector<1x5xf32> to vector<3x5xf32>
    %23 = arith.mulf %21, %22 : vector<3x5xf32>
    %24 = arith.addf %18, %23 : vector<3x5xf32>
    %25 = vector.extract_strided_slice %4 {offsets = [0, 3], sizes = [3, 1], strides = [1, 1]} : vector<3x4xf32> to vector<3x1xf32>
    %26 = vector.extract_strided_slice %1 {offsets = [3, 0], sizes = [1, 5], strides = [1, 1]} : vector<4x5xf32> to vector<1x5xf32>
    %27 = vector.broadcast %25 : vector<3x1xf32> to vector<3x5xf32>
    %28 = vector.broadcast %26 : vector<1x5xf32> to vector<3x5xf32>
    %29 = arith.mulf %27, %28 : vector<3x5xf32>
    %30 = arith.addf %24, %29 : vector<3x5xf32>
    %c0_3 = arith.constant 0 : index
    %c0_4 = arith.constant 0 : index
    %31 = vector.load %arg1[%c0_3, %c0_4] : memref<3x5xf32, #tpu.memory_space<vmem>>, vector<3x5xf32>
    tpu.vector_store %arg1[%c0_3, %c0_4], %30 {strides = array<i32>} : memref<3x5xf32, #tpu.memory_space<vmem>>, vector<3x5xf32>,
    return
  }
}

</mosaic_0001>

<bundles_post_ra>
// kernel: simple_model.1
= control target key start
LH: loop header
LB: loop body
LE: loop exit
PB: predicated region body
PF: predicated region fallthrough
CT: control target
= control target key end

     0   :  { %v231_v1 = vmov 0   ;;  %v232_v3 = vmov 2   ;;  %s295_s0 = inlined_call_operand.vmem [shape: f32[8,5], index: 0, kind: input, shape index: {}]   ;;  %s296_s1 = inlined_call_operand.hbm [shape: f32[3,5], index: 1, kind: output, shape index: {}]  }
   0x1   :  { %v255_v0 = vld [vmem:[%s295_s0] sm:$0x7]  ;;  %198 = vset.pattern.permute.xlu0 %v231_v1  ;;  %200 = vset.pattern.permute.xlu1 %v232_v3 }
   0x2   :  { %v15_v2 = vand.u32 2139095040, %v255_v0  ;;  %v12_v5 = vand.u32 2147483647, %v255_v0 }
   0x4   :  { %v16_v4 = vshrl.u32 %v15_v2, 23 }
   0x6   :  { %v178_v6 = vadd.s32 4294967169, %v16_v4 }
   0x7   :  { %6 = vsyncpa [#allocation3], 0  ;;  %v19_v8 = vand.u32 8388607, %v12_v5  ;;  %v233_v14 = vmov 683565275   ;;  %vm104_vm12 = vweird.f32 %v255_v0 }
   0x8   :  { %v22_v7 = vadd.s32 1, %v178_v6  ;;  %v234_v16 = vmov 2475754826   ;;  %v235_v18 = vmov 2131351028   ;;  %vm14_vm7 = vcmp.lt.s32.totalorder %v255_v0, 0 }
   0x9   :  { %v20_v11 = vor.u32 8388608, %v19_v8  ;;  %v236_v20 = vmov 2102212464   ;;  %v237_v22 = vmov 920167782   ;;  %s241_s12 = smov [#allocation2]  }
   0xa   :  { %vm23_vm0 = vcmp.gt.s32.totalorder %v22_v7, 0  ;;  %v238_v29 = vmov 1326507024   ;;  %vm13_vm8 = vcmp.le.f32.partialorder %v12_v5, 0.7853982  ;;  %s170_s13 = sshll.u32 %s241_s12, 4  ;;  %s171_s13 = int_to_ptr.vmem [resolvable:$true] %s170_s13 }
   0xb   :  { %v24_v9 = vsel %vm23_vm0, %v22_v7, 0  ;;  %v60_v31 = vshll.u32 %v20_v11, 8  ;;  %vm162_vm13 = vcmask 34816   ;;  %s207_s14 = scalar_lea.vmem %s171_s13, 64  ;;  %p212_p1 = scmp.lt.s32.totalorder %s171_s13, %s171_s13 }
   0xc   :  { %v26_v10 = vand.u32 31, %v24_v9  ;;  %v25_v12 = vshrl.u32 %v24_v9, 5  ;;  %p208_p0 = scmp.ne.s32.totalorder %s171_s13, %s207_s14  ;;  %p213_p2 = scmp.lt.s32.totalorder %s207_s14, %s207_s14 }
   0xe   :  { %v27_v13 = vsub.s32 32, %v26_v10  ;;  %v29_v15 = vshll.u32 %v233_v14, %v26_v10  ;;  %v32_v17 = vshll.u32 %v234_v16, %v26_v10  ;;  %v35_v19 = vshll.u32 %v235_v18, %v26_v10  ;;  %p214_p3 = por %p213_p2, %p212_p1 }
   0xf   :  { %v38_v21 = vshll.u32 %v236_v20, %v26_v10  ;;  %v41_v23 = vshll.u32 %v237_v22, %v26_v10  ;;  %vm44_vm1 = vcmp.lt.s32.totalorder %v25_v12, 1  ;;  %vm47_vm2 = vcmp.lt.s32.totalorder %v25_v12, 4 }
  0x10   :  { %v28_v24 = vshrl.u32 %v233_v14, %v27_v13  ;;  %v30_v25 = vshrl.u32 %v234_v16, %v27_v13  ;;  %v33_v26 = vshrl.u32 %v235_v18, %v27_v13  ;;  %v36_v27 = vshrl.u32 %v236_v20, %v27_v13  ;;  %p215_p4 = pnand %p214_p3, %p208_p0 }
  0x11   :  { %v39_v28 = vshrl.u32 %v237_v22, %v27_v13  ;;  %v42_v30 = vshrl.u32 %v238_v29, %v27_v13  ;;  %vm45_vm3 = vcmp.lt.s32.totalorder %v25_v12, 2  ;;  %vm46_vm4 = vcmp.lt.s32.totalorder %v25_v12, 3 }
  0x12   :  { %v31_v32 = vor.u32 %v30_v25, %v29_v15  ;;  %v34_v33 = vor.u32 %v33_v26, %v32_v17  ;;  %v37_v34 = vor.u32 %v36_v27, %v35_v19 }
  0x13   :  { %v40_v35 = vor.u32 %v39_v28, %v38_v21  ;;  %v43_v36 = vor.u32 %v42_v30, %v41_v23 }
  0x14   :  { %v48_v37 = vsel %vm44_vm1, %v28_v24, %v31_v32  ;;  %v49_v38 = vsel %vm47_vm2, %v37_v34, 2102212464  ;;  %v52_v39 = vsel %vm44_vm1, %v31_v32, %v34_v33  ;;  %v56_v40 = vsel %vm44_vm1, %v34_v33, %v37_v34 }
  0x15   :  { %v50_v41 = vsel %vm46_vm4, %v34_v33, %v49_v38  ;;  %v53_v42 = vsel %vm47_vm2, %v40_v35, 920167782  ;;  %v57_v43 = vsel %vm47_vm2, %v43_v36, 1326507024  ;;  %v239_v32 = vmov 1  }
  0x16   :  { %v54_v44 = vsel %vm46_vm4, %v37_v34, %v53_v42  ;;  %v58_v45 = vsel %vm46_vm4, %v40_v35, %v57_v43  ;;  %v51_v46 = vsel %vm45_vm3, %v48_v37, %v50_v41  ;;  %v240_v33 = vmov 3   ;;  %v10_v37 = vld [vmem:[%s295_s0 + $0x3] sm:$0xf] }
  0x17   :  { %v55_v47 = vsel %vm45_vm3, %v52_v39, %v54_v44  ;;  %v59_v48 = vsel %vm45_vm3, %v56_v40, %v58_v45  ;;  %v67_v53 = vmul.u32 %v60_v31, %v51_v46  ;;  %v126_v34 = vlaneseq  ;;  %v182_v45 = vld [vmem:[%s295_s0 + $0x7] ss:$0 sm:$0xff] }
  0x18   :  { %v261_v49 = vmul.u32.u64.low %v60_v31, %v59_v48  ;;  %v262_v50 = vmul.u32.u64.high %v60_v31, %v59_v48, %v261_v49  ;;  %v264_v51 = vmul.u32.u64.low %v60_v31, %v55_v47  ;;  %v265_v52 = vmul.u32.u64.high %v60_v31, %v55_v47, %v264_v51 }
  0x19   :  { %v127_v35 = vshrl.u32 %v126_v34, 7 }
  0x1a   :  { %vm69_vm5 = vc.u32 %v262_v50, %v264_v51  ;;  %v70_v54 = vadd.s32 1, %v265_v52  ;;  %v68_v2 = vadd.s32 %v264_v51, %v262_v50 }
  0x1b   :  { %v128_v36 = vsub.s32 0, %v127_v35  ;;  %v138_v39 = vsub.s32 1, %v127_v35  ;;  %v158_v42 = vsub.s32 3, %v127_v35 }
  0x1c   :  { %v71_v55 = vsel %vm69_vm5, %v70_v54, %v265_v52 }
  0x1d   :  { %v72_v56 = vadd.s32 %v71_v55, %v67_v53  ;;  %v129_v38 = vrot.slane %v10_v37, %v128_v36  ;;  %v139_v44 = vrot.slane %v10_v37, %v138_v39  ;;  %v159_v47 = vrot.slane %v10_v37, %v158_v42 }
  0x1f   :  { %v73_v57 = vadd.s32 536870912, %v72_v56 }
  0x21   :  { %v74_v58 = vshrl.u32 %v73_v57, 30 }
  0x23   :  { %v75_v59 = vshll.u32 %v74_v58, 30  ;;  %v98_v15 = vsub.s32 4, %v74_v58 }
  0x25   :  { %v76_v60 = vsub.s32 %v72_v56, %v75_v59  ;;  %v99_v18 = vsel %vm14_vm7, %v98_v15, %v74_v58 }
  0x26   :  { %v101_v21 = vsel %vm13_vm8, 0, %v99_v18 }
  0x27   :  { %v78_v61 = vsub.s32 0, %v76_v60  ;;  %v105_v22 = vadd.s32 3, %v101_v21 }
  0x29   :  { %v179_v62 = vmin.u32 %v78_v61, %v76_v60  ;;  %v106_v23 = vand.u32 3, %v105_v22 }
  0x2b   :  { %v80_v63 = vclz %v179_v62  ;;  %vm111_vm9 = vcmp.eq.s32.totalorder %v106_v23, 2  ;;  %vm108_vm10 = vcmp.eq.s32.totalorder %v106_v23, 0  ;;  %vm107_vm11 = vcmp.lt.s32.totalorder %v106_v23, 2 }
  0x2d   :  { %v180_v1 = vadd.s32 4294967294, %v80_v63 }
  0x2f   :  { %vm181_vm6 = vcmp.lt.s32.totalorder %v180_v1, 0 }
  0x30   :  { %v83_v3 = vsel %vm181_vm6, 0, %v180_v1 }
  0x31   :  { %v84_v4 = vsub.s32 32, %v83_v3  ;;  %v85_v6 = vshll.u32 %v76_v60, %v83_v3  ;;  %v88_v7 = vsub.s32 4294967266, %v83_v3 }
  0x33   :  { %v86_v8 = vshrl.u32 %v68_v2, %v84_v4  ;;  %v89_v9 = vadd.s32 127, %v88_v7 }
  0x35   :  { %v87_v10 = vor.u32 %v86_v8, %v85_v6  ;;  %v90_v11 = vshll.u32 %v89_v9, 23 }
  0x37   :  { %v91_v12 = vor.u32 4788187, %v90_v11  ;;  %v94_v13 = vcvt.s32.f32 %v87_v10 }
  0x39   :  { %v92_v14 = vand.u32 2147483647, %v91_v12 }
  0x3b   :  { %v95_v16 = vmul.f32 %v94_v13, %v92_v14 }
  0x3d   :  { %v96_v17 = vxor.u32 2147483648, %v95_v16 }
  0x3f   :  { %v97_v19 = vsel %vm14_vm7, %v96_v17, %v95_v16 }
  0x40   :  { %v100_v20 = vsel %vm13_vm8, %v255_v0, %v97_v19 }
  0x41   :  { %203 = vcosq.f32 %v100_v20 }
  0x42   :  { %205 = vsinq.f32 %v100_v20 }
  0x4b   :  { %v204_v24 = vpop.eup %203 }
  0x4c   :  { %v206_v25 = vpop.eup %205  ;;  %v112_v26 = vxor.u32 2147483648, %v204_v24 }
  0x4d   :  { %v109_v27 = vxor.u32 2147483648, %v206_v25 }
  0x4e   :  { %v113_v5 = vsel %vm111_vm9, %v112_v26, %v206_v25 }
  0x4f   :  { %v110_v28 = vsel %vm108_vm10, %v204_v24, %v109_v27 }
  0x50   :  { %v114_v29 = vsel %vm107_vm11, %v110_v28, %v113_v5 }
  0x51   :  { %v115_v30 = vsel %vm104_vm12, nan, %v114_v29 }
  0x52   :  { %v116_v31 = vadd.f32 %v115_v30, %v255_v0  ;;  %v148_v0 = vsub.s32 2, %v127_v35 }
  0x54   :  { %123 = vperm.xlu0 %198, %v116_v31   ;;  %143 = vperm.xlu1 %200, %v116_v31   ;;  %v149_v46 = vrot.slane %v10_v37, %v148_v0 }
  0x58   :  { %199 = vset.pattern.permute.xlu0 %v239_v32  ;;  %201 = vset.pattern.permute.xlu1 %v240_v33 }
  0x59   :  { %133 = vperm.xlu0 %199, %v116_v31   ;;  %153 = vperm.xlu1 %201, %v116_v31  }
  0x5d   :  { %202 = vset.pattern.permute.xlu0 %v240_v33 }
  0xd3   :  { %v124_v40 = vpop.permute.xlu0 %123  ;;  %v144_v41 = vpop.permute.xlu1 %143 }
  0xd4   :  { %v130_v43 = vmul.f32 %v129_v38, %v124_v40  ;;  %v150_v52 = vmul.f32 %v149_v46, %v144_v41 }
  0xd6   :  { %v131_v50 = vadd.f32 %v182_v45, %v130_v43 }
  0xd8   :  { %v134_v48 = vpop.permute.xlu0 %133  ;;  %v154_v49 = vpop.permute.xlu1 %153 }
  0xd9   :  { %v140_v51 = vmul.f32 %v139_v44, %v134_v48  ;;  %v160_v54 = vmul.f32 %v159_v47, %v154_v49 }
  0xdb   :  { %v141_v53 = vadd.f32 %v140_v51, %v131_v50 }
  0xdd   :  { %v151_v55 = vadd.f32 %v150_v52, %v141_v53 }
  0xdf   :  { %v161_v56 = vadd.f32 %v160_v54, %v151_v55 }
  0xe1   :  { %163 = vst.msk [vmem:[#allocation2] sm:$0x7] %vm162_vm13, %v161_v56 }
  0xe2   :  { %218 = shalt.err (!%p215_p4)
}
  0xe3   :  { %s219_s16 = scalar_lea.hbm %s296_s1, 64 }
  0xe4   :  { %p220_p5 = scmp.ne.s32.totalorder %s296_s1, %s219_s16  ;;  %p223_p6 = scmp.lt.u32.totalorder %s219_s16, %s296_s1 }
  0xe6   :  { %p225_p7 = pnand %p223_p6, %p220_p5 }
  0xe8   :  { %228 = shalt.err (!%p225_p7)
}
  0xe9   :  { %173 = dma.vmem_to_hbm [thread:$0]  %s171_s13, 64, %s296_s1, [#allocation3]  }
  0xea   :  { %229 = dma.done.wait [#allocation3], 64  }
  0xeb   :  { %230 = vsyncadd [#allocation3], 4294967232 }
  0xec   :  { %177 = vsyncpa [#allocation3], 1 }

</bundles_post_ra>
